<compile_context>
chip_gen: v7x
topology: tpu7x:2x2x1
jax: 0.10.0
libtpu: 0.0.40
codegen_flags: <defaults>
</compile_context>

<pallas_src>
import functools

import jax
import jax.numpy as jnp
import numpy as np
from jax.experimental import pallas as pl
from jax.experimental.pallas import tpu as pltpu  # noqa: F401  (TPU backend)


# ----------------------------------------------------------------------------
# Fused Pallas kernel: entire GIN forward in one invocation (no grid)
# ----------------------------------------------------------------------------

def gin_fused_kernel(adj_ref, x_ref, pool_ref,
                     pre_w_ref, pre_b_ref,
                     w1_ref, b1_ref, w2_ref, b2_ref,
                     post_w_ref, post_b_ref,
                     read_w_ref, read_b_ref,
                     o_ref, *, nlayer, nclass):
    """adj/x/pool/W* are bf16 (MXU operands); biases & all epilogue math f32."""
    # --- pre: h = x @ Wpre + bpre --------------------------------------------
    h = jnp.dot(x_ref[...], pre_w_ref[...],
                preferred_element_type=jnp.float32) + pre_b_ref[...]

    adj = adj_ref[...]                       # [N, N] bf16, VMEM-resident

    # --- NLAYER x GINConv (eps = 0) + outer ReLU; dropout == identity --------
    for l in range(nlayer):                  # static unroll, nlayer is Python int
        hb = h.astype(jnp.bfloat16)
        agg = jnp.dot(adj, hb, preferred_element_type=jnp.float32) + h   # x + A@x
        t = jnp.dot(agg.astype(jnp.bfloat16), w1_ref[l],
                    preferred_element_type=jnp.float32) + b1_ref[l]
        t = jnp.maximum(t, 0.0)
        t = jnp.dot(t.astype(jnp.bfloat16), w2_ref[l],
                    preferred_element_type=jnp.float32) + b2_ref[l]
        h = jnp.maximum(t, 0.0)              # outer F.relu in GIN.forward

    # --- global_add_pool: pooled[g] = sum_{n: batch[n]==g} h[n] = P @ h ------
    pooled = jnp.dot(pool_ref[...], h.astype(jnp.bfloat16),
                     preferred_element_type=jnp.float32)

    # --- post (Linear+ReLU) -> readout (Linear) -> log_softmax ---------------
    p = jnp.dot(pooled.astype(jnp.bfloat16), post_w_ref[...],
                preferred_element_type=jnp.float32) + post_b_ref[...]
    p = jnp.maximum(p, 0.0)
    logits = jnp.dot(p.astype(jnp.bfloat16), read_w_ref[...],
                     preferred_element_type=jnp.float32) + read_b_ref[...]

    # Mask padded class lanes so the lane-dense padding never affects softmax.
    col = jax.lax.broadcasted_iota(jnp.int32, logits.shape, 1)
    logits = jnp.where(col < nclass, logits, -1e30)

    m = jnp.max(logits, axis=-1, keepdims=True)          # EUP/XLU work: free
    z = logits - m
    lse = jnp.log(jnp.sum(jnp.exp(z), axis=-1, keepdims=True))
    o_ref[...] = z - lse


# ----------------------------------------------------------------------------
# Wrapper: padding to lane width, bf16 casting, single pallas_call
# ----------------------------------------------------------------------------

_LANE = 128
_SUBLANE = 8


def _ceil_to(v, m):
    return ((v + m - 1) // m) * m


def _pad2(a, rows, cols):
    return jnp.pad(a, ((0, rows - a.shape[0]), (0, cols - a.shape[1])))


def _full_spec(shape):
    # Whole array as one block (no grid); full-dim blocks satisfy TPU tiling.
    return pl.BlockSpec(shape, lambda: (0,) * len(shape))


def gin_forward(params, x, adj, pool):
    """Full GIN forward pass (inference), one fused Pallas kernel."""
    n_nodes, nfeat = x.shape
    nhid = params["pre_w"].shape[1]
    nclass = params["read_w"].shape[1]
    n_graphs = pool.shape[0]
    nlayer = len(params["convs"])

    f_pad = _ceil_to(nfeat, _LANE)
    h_pad = _ceil_to(nhid, _LANE)
    c_pad = _ceil_to(nclass, _LANE)
    g_pad = _ceil_to(n_graphs, _SUBLANE)

    bf16 = jnp.bfloat16
    # Matmul operands -> bf16 (adj / pool are 0-1: exact). Biases stay f32.
    adj_p = adj.astype(bf16)                                    # [N, N]
    x_p = _pad2(x, n_nodes, f_pad).astype(bf16)                 # [N, Fp]
    pool_p = _pad2(pool, g_pad, n_nodes).astype(bf16)           # [Gp, N]

    pre_w = _pad2(params["pre_w"], f_pad, h_pad).astype(bf16)   # [Fp, Hp]
    pre_b = _pad2(params["pre_b"], 1, h_pad)                    # [1, Hp] f32

    w1s = jnp.stack([_pad2(w1, h_pad, h_pad) for (w1, _, _, _) in params["convs"]]).astype(bf16)
    b1s = jnp.stack([_pad2(b1, 1, h_pad) for (_, b1, _, _) in params["convs"]])
    w2s = jnp.stack([_pad2(w2, h_pad, h_pad) for (_, _, w2, _) in params["convs"]]).astype(bf16)
    b2s = jnp.stack([_pad2(b2, 1, h_pad) for (_, _, _, b2) in params["convs"]])

    post_w = _pad2(params["post_w"], h_pad, h_pad).astype(bf16)
    post_b = _pad2(params["post_b"], 1, h_pad)
    read_w = _pad2(params["read_w"], h_pad, c_pad).astype(bf16)
    read_b = _pad2(params["read_b"], 1, c_pad)

    args = (adj_p, x_p, pool_p, pre_w, pre_b,
            w1s, b1s, w2s, b2s, post_w, post_b, read_w, read_b)

    out_full = pl.pallas_call(
        functools.partial(gin_fused_kernel, nlayer=nlayer, nclass=nclass),
        out_shape=jax.ShapeDtypeStruct((g_pad, c_pad), jnp.float32),
        in_specs=[_full_spec(a.shape) for a in args],
        out_specs=_full_spec((g_pad, c_pad)),
    )(*args)

    # Slice away lane/sublane padding in the wrapper (layout plumbing only).
    return out_full[:n_graphs, :nclass]


# ----------------------------------------------------------------------------
# Pure-JAX f32 reference (for a loose correctness sanity check)
# ----------------------------------------------------------------------------

def gin_reference(params, x, adj, pool):
    h = x @ params["pre_w"] + params["pre_b"]
    for (w1, b1, w2, b2) in params["convs"]:
        agg = adj @ h + h
        t = jnp.maximum(agg @ w1 + b1, 0.0)
        t = t @ w2 + b2
        h = jnp.maximum(t, 0.0)
    pooled = pool @ h
    p = jnp.maximum(pooled @ params["post_w"] + params["post_b"], 0.0)
    logits = p @ params["read_w"] + params["read_b"]
    return jax.nn.log_softmax(logits, axis=1)


# ----------------------------------------------------------------------------
# Deterministic parameter init + example graph
# ----------------------------------------------------------------------------

def init_linear(key, fan_in, fan_out):
    k1, k2 = jax.random.split(key)
    bound = 1.0 / (fan_in ** 0.5)
    w = jax.random.uniform(k1, (fan_in, fan_out), jnp.float32, -bound, bound)
    b = jax.random.uniform(k2, (1, fan_out), jnp.float32, -bound, bound)
    return w, b


if __name__ == "__main__":
    # Small shapes consistent with the module.
    N, NFEAT, NHID, NCLASS, NLAYER = 32, 16, 32, 8, 2
    NUM_GRAPHS = 4
    NODES_PER_GRAPH = N // NUM_GRAPHS

    key = jax.random.PRNGKey(0)
    kx, kparams = jax.random.split(key)

    # Node features.
    x = jax.random.normal(kx, (N, NFEAT), jnp.float32)

    # Deterministic bidirectional ring graph within each component.
    src, dst = [], []
    for g in range(NUM_GRAPHS):
        base = g * NODES_PER_GRAPH
        for i in range(NODES_PER_GRAPH):
            a = base + i
            b = base + (i + 1) % NODES_PER_GRAPH
            src += [a, b]
            dst += [b, a]
    src = jnp.array(src, jnp.int32)
    dst = jnp.array(dst, jnp.int32)
    adj = jnp.zeros((N, N), jnp.float32).at[dst, src].add(1.0)

    # Batch assignment -> one-hot pooling matrix [G, N].
    batch = jnp.repeat(jnp.arange(NUM_GRAPHS), NODES_PER_GRAPH)
    pool = (batch[None, :] == jnp.arange(NUM_GRAPHS)[:, None]).astype(jnp.float32)

    # Parameters (deterministic).
    keys = jax.random.split(kparams, 2 * NLAYER + 3)
    params = {}
    params["pre_w"], params["pre_b"] = init_linear(keys[0], NFEAT, NHID)
    convs = []
    for layer in range(NLAYER):
        w1, b1 = init_linear(keys[1 + 2 * layer], NHID, NHID)
        w2, b2 = init_linear(keys[2 + 2 * layer], NHID, NHID)
        convs.append((w1, b1, w2, b2))
    params["convs"] = convs
    params["post_w"], params["post_b"] = init_linear(keys[2 * NLAYER + 1], NHID, NHID)
    params["read_w"], params["read_b"] = init_linear(keys[2 * NLAYER + 2], NHID, NCLASS)

    out = gin_forward(params, x, adj, pool)
    jax.block_until_ready(out)

    assert out.shape == (NUM_GRAPHS, NCLASS)
    # log_softmax rows should exponentiate-sum to 1.
    assert jnp.allclose(jnp.sum(jnp.exp(out), axis=1), 1.0, atol=1e-3)
    # Loose check vs f32 reference (bf16 MXU operands -> small rounding diffs).
    ref = gin_reference(params, x, adj, pool)
    assert np.allclose(np.asarray(out), np.asarray(ref), atol=0.25), (
        float(np.max(np.abs(np.asarray(out) - np.asarray(ref)))))
    print("KERNEL_OK")
</pallas_src>

<mosaic_0001>
module attributes {stable_mosaic.version = 11 : i64} {
  func.func @gin_fused_kernel(%arg0: memref<32x32xbf16, #tpu.memory_space<vmem>>, %arg1: memref<32x128xbf16, #tpu.memory_space<vmem>>, %arg2: memref<8x32xbf16, #tpu.memory_space<vmem>>, %arg3: memref<128x128xbf16, #tpu.memory_space<vmem>>, %arg4: memref<1x128xf32, #tpu.memory_space<vmem>>, %arg5: memref<2x128x128xbf16, #tpu.memory_space<vmem>>, %arg6: memref<2x1x128xf32, #tpu.memory_space<vmem>>, %arg7: memref<2x128x128xbf16, #tpu.memory_space<vmem>>, %arg8: memref<2x1x128xf32, #tpu.memory_space<vmem>>, %arg9: memref<128x128xbf16, #tpu.memory_space<vmem>>, %arg10: memref<1x128xf32, #tpu.memory_space<vmem>>, %arg11: memref<128x128xbf16, #tpu.memory_space<vmem>>, %arg12: memref<1x128xf32, #tpu.memory_space<vmem>>, %arg13: memref<8x128xf32, #tpu.memory_space<vmem>>) attributes {dimension_semantics = [], scalar_prefetch = 0 : i64, scratch_operands = 0 : i64, tpu.core_type = #tpu.core_type<tc>} {
    %c0 = arith.constant 0 : index
    %c0_0 = arith.constant 0 : index
    %0 = vector.load %arg1[%c0, %c0_0] : memref<32x128xbf16, #tpu.memory_space<vmem>>, vector<32x128xbf16>
    %c0_1 = arith.constant 0 : index
    %c0_2 = arith.constant 0 : index
    %1 = vector.load %arg3[%c0_1, %c0_2] : memref<128x128xbf16, #tpu.memory_space<vmem>>, vector<128x128xbf16>
    %cst = arith.constant dense<0.000000e+00> : vector<32x128xf32>
    %2 = tpu.matmul %0, %1, %cst {dimension_numbers = #tpu.dot_dimension_numbers<[1], [0], [0], [1], [0, 0, 1, 1], [], []>} : vector<32x128xbf16>, vector<128x128xbf16>, vector<32x128xf32> -> vector<32x128xf32>
    %c0_3 = arith.constant 0 : index
    %c0_4 = arith.constant 0 : index
    %3 = vector.load %arg4[%c0_3, %c0_4] : memref<1x128xf32, #tpu.memory_space<vmem>>, vector<1x128xf32>
    %4 = vector.broadcast %3 : vector<1x128xf32> to vector<32x128xf32>
    %5 = arith.addf %2, %4 : vector<32x128xf32>
    %c0_5 = arith.constant 0 : index
    %c0_6 = arith.constant 0 : index
    %6 = vector.load %arg0[%c0_5, %c0_6] : memref<32x32xbf16, #tpu.memory_space<vmem>>, vector<32x32xbf16>
    %7 = arith.truncf %5 : vector<32x128xf32> to vector<32x128xbf16>
    %cst_7 = arith.constant dense<0.000000e+00> : vector<32x128xf32>
    %8 = tpu.matmul %6, %7, %cst_7 {dimension_numbers = #tpu.dot_dimension_numbers<[1], [0], [0], [1], [0, 0, 1, 1], [], []>} : vector<32x32xbf16>, vector<32x128xbf16>, vector<32x128xf32> -> vector<32x128xf32>
    %9 = arith.addf %8, %5 : vector<32x128xf32>
    %10 = arith.truncf %9 : vector<32x128xf32> to vector<32x128xbf16>
    %c0_8 = arith.constant 0 : index
    %c0_9 = arith.constant 0 : index
    %c0_10 = arith.constant 0 : index
    %11 = vector.load %arg5[%c0_8, %c0_9, %c0_10] : memref<2x128x128xbf16, #tpu.memory_space<vmem>>, vector<1x128x128xbf16>
    %12 = vector.shape_cast %11 : vector<1x128x128xbf16> to vector<128x128xbf16>
    %cst_11 = arith.constant dense<0.000000e+00> : vector<32x128xf32>
    %13 = tpu.matmul %10, %12, %cst_11 {dimension_numbers = #tpu.dot_dimension_numbers<[1], [0], [0], [1], [0, 0, 1, 1], [], []>} : vector<32x128xbf16>, vector<128x128xbf16>, vector<32x128xf32> -> vector<32x128xf32>
    %c0_12 = arith.constant 0 : index
    %c0_13 = arith.constant 0 : index
    %c0_14 = arith.constant 0 : index
    %14 = vector.load %arg6[%c0_12, %c0_13, %c0_14] : memref<2x1x128xf32, #tpu.memory_space<vmem>>, vector<1x1x128xf32>
    %15 = vector.shape_cast %14 : vector<1x1x128xf32> to vector<1x128xf32>
    %16 = vector.broadcast %15 : vector<1x128xf32> to vector<32x128xf32>
    %17 = arith.addf %13, %16 : vector<32x128xf32>
    %cst_15 = arith.constant 0.000000e+00 : f32
    %18 = vector.broadcast %cst_15 : f32 to vector<32x128xf32>
    %19 = arith.maximumf %17, %18 : vector<32x128xf32>
    %20 = arith.truncf %19 : vector<32x128xf32> to vector<32x128xbf16>
    %c0_16 = arith.constant 0 : index
    %c0_17 = arith.constant 0 : index
    %c0_18 = arith.constant 0 : index
    %21 = vector.load %arg7[%c0_16, %c0_17, %c0_18] : memref<2x128x128xbf16, #tpu.memory_space<vmem>>, vector<1x128x128xbf16>
    %22 = vector.shape_cast %21 : vector<1x128x128xbf16> to vector<128x128xbf16>
    %cst_19 = arith.constant dense<0.000000e+00> : vector<32x128xf32>
    %23 = tpu.matmul %20, %22, %cst_19 {dimension_numbers = #tpu.dot_dimension_numbers<[1], [0], [0], [1], [0, 0, 1, 1], [], []>} : vector<32x128xbf16>, vector<128x128xbf16>, vector<32x128xf32> -> vector<32x128xf32>
    %c0_20 = arith.constant 0 : index
    %c0_21 = arith.constant 0 : index
    %c0_22 = arith.constant 0 : index
    %24 = vector.load %arg8[%c0_20, %c0_21, %c0_22] : memref<2x1x128xf32, #tpu.memory_space<vmem>>, vector<1x1x128xf32>
    %25 = vector.shape_cast %24 : vector<1x1x128xf32> to vector<1x128xf32>
    %26 = vector.broadcast %25 : vector<1x128xf32> to vector<32x128xf32>
    %27 = arith.addf %23, %26 : vector<32x128xf32>
    %cst_23 = arith.constant 0.000000e+00 : f32
    %28 = vector.broadcast %cst_23 : f32 to vector<32x128xf32>
    %29 = arith.maximumf %27, %28 : vector<32x128xf32>
    %30 = arith.truncf %29 : vector<32x128xf32> to vector<32x128xbf16>
    %cst_24 = arith.constant dense<0.000000e+00> : vector<32x128xf32>
    %31 = tpu.matmul %6, %30, %cst_24 {dimension_numbers = #tpu.dot_dimension_numbers<[1], [0], [0], [1], [0, 0, 1, 1], [], []>} : vector<32x32xbf16>, vector<32x128xbf16>, vector<32x128xf32> -> vector<32x128xf32>
    %32 = arith.addf %31, %29 : vector<32x128xf32>
    %33 = arith.truncf %32 : vector<32x128xf32> to vector<32x128xbf16>
    %c1 = arith.constant 1 : index
    %c0_25 = arith.constant 0 : index
    %c0_26 = arith.constant 0 : index
    %34 = vector.load %arg5[%c1, %c0_25, %c0_26] : memref<2x128x128xbf16, #tpu.memory_space<vmem>>, vector<1x128x128xbf16>
    %35 = vector.shape_cast %34 : vector<1x128x128xbf16> to vector<128x128xbf16>
    %cst_27 = arith.constant dense<0.000000e+00> : vector<32x128xf32>
    %36 = tpu.matmul %33, %35, %cst_27 {dimension_numbers = #tpu.dot_dimension_numbers<[1], [0], [0], [1], [0, 0, 1, 1], [], []>} : vector<32x128xbf16>, vector<128x128xbf16>, vector<32x128xf32> -> vector<32x128xf32>
    %c1_28 = arith.constant 1 : index
    %c0_29 = arith.constant 0 : index
    %c0_30 = arith.constant 0 : index
    %37 = vector.load %arg6[%c1_28, %c0_29, %c0_30] : memref<2x1x128xf32, #tpu.memory_space<vmem>>, vector<1x1x128xf32>
    %38 = vector.shape_cast %37 : vector<1x1x128xf32> to vector<1x128xf32>
    %39 = vector.broadcast %38 : vector<1x128xf32> to vector<32x128xf32>
    %40 = arith.addf %36, %39 : vector<32x128xf32>
    %cst_31 = arith.constant 0.000000e+00 : f32
    %41 = vector.broadcast %cst_31 : f32 to vector<32x128xf32>
    %42 = arith.maximumf %40, %41 : vector<32x128xf32>
    %43 = arith.truncf %42 : vector<32x128xf32> to vector<32x128xbf16>
    %c1_32 = arith.constant 1 : index
    %c0_33 = arith.constant 0 : index
    %c0_34 = arith.constant 0 : index
    %44 = vector.load %arg7[%c1_32, %c0_33, %c0_34] : memref<2x128x128xbf16, #tpu.memory_space<vmem>>, vector<1x128x128xbf16>
    %45 = vector.shape_cast %44 : vector<1x128x128xbf16> to vector<128x128xbf16>
    %cst_35 = arith.constant dense<0.000000e+00> : vector<32x128xf32>
    %46 = tpu.matmul %43, %45, %cst_35 {dimension_numbers = #tpu.dot_dimension_numbers<[1], [0], [0], [1], [0, 0, 1, 1], [], []>} : vector<32x128xbf16>, vector<128x128xbf16>, vector<32x128xf32> -> vector<32x128xf32>
    %c1_36 = arith.constant 1 : index
    %c0_37 = arith.constant 0 : index
    %c0_38 = arith.constant 0 : index
    %47 = vector.load %arg8[%c1_36, %c0_37, %c0_38] : memref<2x1x128xf32, #tpu.memory_space<vmem>>, vector<1x1x128xf32>
    %48 = vector.shape_cast %47 : vector<1x1x128xf32> to vector<1x128xf32>
    %49 = vector.broadcast %48 : vector<1x128xf32> to vector<32x128xf32>
    %50 = arith.addf %46, %49 : vector<32x128xf32>
    %cst_39 = arith.constant 0.000000e+00 : f32
    %51 = vector.broadcast %cst_39 : f32 to vector<32x128xf32>
    %52 = arith.maximumf %50, %51 : vector<32x128xf32>
    %c0_40 = arith.constant 0 : index
    %c0_41 = arith.constant 0 : index
    %53 = vector.load %arg2[%c0_40, %c0_41] : memref<8x32xbf16, #tpu.memory_space<vmem>>, vector<8x32xbf16>
    %54 = arith.truncf %52 : vector<32x128xf32> to vector<32x128xbf16>
    %cst_42 = arith.constant dense<0.000000e+00> : vector<8x128xf32>
    %55 = tpu.matmul %53, %54, %cst_42 {dimension_numbers = #tpu.dot_dimension_numbers<[1], [0], [0], [1], [0, 0, 1, 1], [], []>} : vector<8x32xbf16>, vector<32x128xbf16>, vector<8x128xf32> -> vector<8x128xf32>
    %56 = arith.truncf %55 : vector<8x128xf32> to vector<8x128xbf16>
    %c0_43 = arith.constant 0 : index
    %c0_44 = arith.constant 0 : index
    %57 = vector.load %arg9[%c0_43, %c0_44] : memref<128x128xbf16, #tpu.memory_space<vmem>>, vector<128x128xbf16>
    %cst_45 = arith.constant dense<0.000000e+00> : vector<8x128xf32>
    %58 = tpu.matmul %56, %57, %cst_45 {dimension_numbers = #tpu.dot_dimension_numbers<[1], [0], [0], [1], [0, 0, 1, 1], [], []>} : vector<8x128xbf16>, vector<128x128xbf16>, vector<8x128xf32> -> vector<8x128xf32>
    %c0_46 = arith.constant 0 : index
    %c0_47 = arith.constant 0 : index
    %59 = vector.load %arg10[%c0_46, %c0_47] : memref<1x128xf32, #tpu.memory_space<vmem>>, vector<1x128xf32>
    %60 = vector.broadcast %59 : vector<1x128xf32> to vector<8x128xf32>
    %61 = arith.addf %58, %60 : vector<8x128xf32>
    %cst_48 = arith.constant 0.000000e+00 : f32
    %62 = vector.broadcast %cst_48 : f32 to vector<8x128xf32>
    %63 = arith.maximumf %61, %62 : vector<8x128xf32>
    %64 = arith.truncf %63 : vector<8x128xf32> to vector<8x128xbf16>
    %c0_49 = arith.constant 0 : index
    %c0_50 = arith.constant 0 : index
    %65 = vector.load %arg11[%c0_49, %c0_50] : memref<128x128xbf16, #tpu.memory_space<vmem>>, vector<128x128xbf16>
    %cst_51 = arith.constant dense<0.000000e+00> : vector<8x128xf32>
    %66 = tpu.matmul %64, %65, %cst_51 {dimension_numbers = #tpu.dot_dimension_numbers<[1], [0], [0], [1], [0, 0, 1, 1], [], []>} : vector<8x128xbf16>, vector<128x128xbf16>, vector<8x128xf32> -> vector<8x128xf32>
    %c0_52 = arith.constant 0 : index
    %c0_53 = arith.constant 0 : index
    %67 = vector.load %arg12[%c0_52, %c0_53] : memref<1x128xf32, #tpu.memory_space<vmem>>, vector<1x128xf32>
    %68 = vector.broadcast %67 : vector<1x128xf32> to vector<8x128xf32>
    %69 = arith.addf %66, %68 : vector<8x128xf32>
    %70 = tpu.iota {dimensions = array<i32: 1>} : vector<8x128xi32>
    %c8_i32 = arith.constant 8 : i32
    %71 = vector.broadcast %c8_i32 : i32 to vector<8x128xi32>
    %72 = arith.cmpi slt, %70, %71 : vector<8x128xi32>
    %cst_54 = arith.constant -1.000000e+30 : f32
    %73 = vector.broadcast %cst_54 : f32 to vector<8x128xf32>
    %74 = arith.select %72, %69, %73 : vector<8x128xi1>, vector<8x128xf32>
    %cst_55 = arith.constant dense<0xFF800000> : vector<8xf32>
    %75 = vector.multi_reduction <maximumf>, %74, %cst_55 [1] : vector<8x128xf32> to vector<8xf32>
    %76 = vector.shape_cast %75 : vector<8xf32> to vector<8x1xf32>
    %77 = vector.broadcast %76 : vector<8x1xf32> to vector<8x128xf32>
    %78 = arith.subf %74, %77 : vector<8x128xf32>
    %79 = math.exp %78 : vector<8x128xf32>
    %cst_56 = arith.constant dense<0.000000e+00> : vector<8xf32>
    %80 = vector.multi_reduction <add>, %79, %cst_56 [1] : vector<8x128xf32> to vector<8xf32>
    %81 = vector.shape_cast %80 : vector<8xf32> to vector<8x1xf32>
    %82 = math.log %81 : vector<8x1xf32>
    %83 = vector.broadcast %82 : vector<8x1xf32> to vector<8x128xf32>
    %84 = arith.subf %78, %83 : vector<8x128xf32>
    %c0_57 = arith.constant 0 : index
    %c0_58 = arith.constant 0 : index
    %85 = vector.load %arg13[%c0_57, %c0_58] : memref<8x128xf32, #tpu.memory_space<vmem>>, vector<8x128xf32>
    tpu.vector_store %arg13[%c0_57, %c0_58], %84 {strides = array<i32>} : memref<8x128xf32, #tpu.memory_space<vmem>>, vector<8x128xf32>,
    return
  }
}

</mosaic_0001>

<bundles_post_ra>
// kernel: tpu_custom_call.1
= control target key start
LH: loop header
LB: loop body
LE: loop exit
PB: predicated region body
PF: predicated region fallthrough
CT: control target
= control target key end

     0   :  { %18 = vsyncpa [#allocation3], 0  ;;  %s2075_s0 = inlined_call_operand.hbm [shape: bf16[32,32], index: 0, kind: input, shape index: {}]   ;;  %s2076_s1 = inlined_call_operand.hbm [shape: bf16[32,128], index: 1, kind: input, shape index: {}]   ;;  %s2077_s2 = inlined_call_operand.vmem [shape: bf16[8,32], index: 2, kind: input, shape index: {}]   ;;  %s2078_s3 = inlined_call_operand.hbm [shape: bf16[128,128], index: 3, kind: input, shape index: {}]   ;;  %s2079_s4 = inlined_call_operand.vmem [shape: f32[1,128], index: 4, kind: input, shape index: {}]   ;;  %s2080_s5 = inlined_call_operand.hbm [shape: bf16[2,128,128], index: 5, kind: input, shape index: {}]   ;;  %s2081_s6 = inlined_call_operand.vmem [shape: f32[2,1,128], index: 6, kind: input, shape index: {}]   ;;  %s2082_s7 = inlined_call_operand.hbm [shape: bf16[2,128,128], index: 7, kind: input, shape index: {}]   ;;  %s2083_s8 = inlined_call_operand.vmem [shape: f32[2,1,128], index: 8, kind: input, shape index: {}]   ;;  %s2084_s9 = inlined_call_operand.hbm [shape: bf16[128,128], index: 9, kind: input, shape index: {}]   ;;  %s2085_s10 = inlined_call_operand.vmem [shape: f32[1,128], index: 10, kind: input, shape index: {}]   ;;  %s2086_s11 = inlined_call_operand.hbm [shape: bf16[128,128], index: 11, kind: input, shape index: {}]   ;;  %s2087_s12 = inlined_call_operand.vmem [shape: f32[1,128], index: 12, kind: input, shape index: {}]   ;;  %s2088_s13 = inlined_call_operand.hbm [shape: f32[8,128], index: 13, kind: output, shape index: {}]  }
   0x1   :  { %19 = vsyncpa [#allocation6], 0 }
   0x2   :  { %20 = vsyncpa [#allocation9], 0 }
   0x3   :  { %21 = vsyncpa [#allocation12], 0 }
   0x4   :  { %22 = vsyncpa [#allocation4], 0  ;;  %s1791_s25 = smov [#allocation5]   ;;  %s1792_s27 = smov [#allocation8]  }
   0x5   :  { %s40_s26 = sshll.u32 %s1791_s25, 4  ;;  %s68_s28 = sshll.u32 %s1792_s27, 4  ;;  %s41_s26 = int_to_ptr.vmem [resolvable:$true] %s40_s26  ;;  %s1873_s28 = int_to_ptr.vmem [resolvable:$true] %s68_s28 }
   0x6   :  { %s1605_s14 = scalar_lea.hbm %s2076_s1, 256 }
   0x7   :  { %p1606_p0 = scmp.ne.s32.totalorder %s2076_s1, %s1605_s14  ;;  %p1609_p1 = scmp.lt.u32.totalorder %s1605_s14, %s2076_s1 }
   0x9   :  { %p1611_p2 = pnand %p1609_p1, %p1606_p0 }
   0xb   :  { %1614 = shalt.err (!%p1611_p2)
}
   0xc   :  { %s1615_s19 = scalar_lea.vmem %s41_s26, 256  ;;  %p1620_p4 = scmp.lt.s32.totalorder %s41_s26, %s41_s26 }
   0xd   :  { %p1616_p3 = scmp.ne.s32.totalorder %s41_s26, %s1615_s19  ;;  %p1621_p5 = scmp.lt.s32.totalorder %s1615_s19, %s1615_s19 }
   0xf   :  { %p1622_p6 = por %p1621_p5, %p1620_p4 }
  0x11   :  { %p1623_p7 = pnand %p1622_p6, %p1616_p3 }
  0x13   :  { %1626 = shalt.err (!%p1623_p7)
}
  0x14   :  { %s1793_s20 = smov 64   ;;  %s1794_s21 = smov 4  }
  0x15   :  { %46 = dma.hbm_to_vmem [thread:$0]  %s2076_s1, 256, %s41_s26, [#allocation6], %s1793_s20, %s1793_s20, %s1794_s21  }
  0x16   :  { %s1627_s27 = scalar_lea.hbm %s2080_s5, 2048 }
  0x17   :  { %p1628_p8 = scmp.ne.s32.totalorder %s2080_s5, %s1627_s27  ;;  %p1631_p9 = scmp.lt.u32.totalorder %s1627_s27, %s2080_s5 }
  0x19   :  { %p1633_p10 = pnand %p1631_p9, %p1628_p8 }
  0x1b   :  { %1636 = shalt.err (!%p1633_p10)
}
  0x1c   :  { %s1637_s16 = scalar_lea.vmem %s1873_s28, 2048  ;;  %p1642_p12 = scmp.lt.s32.totalorder %s1873_s28, %s1873_s28 }
  0x1d   :  { %p1638_p11 = scmp.ne.s32.totalorder %s1873_s28, %s1637_s16  ;;  %p1643_p13 = scmp.lt.s32.totalorder %s1637_s16, %s1637_s16 }
  0x1f   :  { %p1644_p0 = por %p1643_p13, %p1642_p12 }
  0x21   :  { %p1645_p1 = pnand %p1644_p0, %p1638_p11 }
  0x23   :  { %1648 = shalt.err (!%p1645_p1)
}
  0x24   :  { %74 = dma.hbm_to_vmem [thread:$0]  %s2080_s5, 2048, %s1873_s28, [#allocation9], %s1793_s20, %s1793_s20, %s1794_s21  }
  0x25   :  { %s1795_s17 = smov [#allocation11]   ;;  %s1796_s19 = smov [#allocation2]  }
  0x26   :  { %s96_s18 = sshll.u32 %s1795_s17, 4  ;;  %s28_s22 = sshll.u32 %s1796_s19, 4  ;;  %s97_s18 = int_to_ptr.vmem [resolvable:$true] %s96_s18  ;;  %s1910_s22 = int_to_ptr.vmem [resolvable:$true] %s28_s22 }
  0x27   :  { %s1649_s25 = scalar_lea.hbm %s2084_s9, 1024 }
  0x28   :  { %p1650_p2 = scmp.ne.s32.totalorder %s2084_s9, %s1649_s25  ;;  %p1653_p3 = scmp.lt.u32.totalorder %s1649_s25, %s2084_s9 }
  0x2a   :  { %p1655_p4 = pnand %p1653_p3, %p1650_p2 }
  0x2c   :  { %1658 = shalt.err (!%p1655_p4)
}
  0x2d   :  { %s1659_s5 = scalar_lea.vmem %s97_s18, 1024  ;;  %p1664_p6 = scmp.lt.s32.totalorder %s97_s18, %s97_s18 }
  0x2e   :  { %p1660_p5 = scmp.ne.s32.totalorder %s97_s18, %s1659_s5  ;;  %p1665_p7 = scmp.lt.s32.totalorder %s1659_s5, %s1659_s5 }
  0x30   :  { %p1666_p8 = por %p1665_p7, %p1664_p6 }
  0x32   :  { %p1667_p9 = pnand %p1666_p8, %p1660_p5 }
  0x34   :  { %1670 = shalt.err (!%p1667_p9)
}
  0x35   :  { %102 = dma.hbm_to_vmem [thread:$0]  %s2084_s9, 1024, %s97_s18, [#allocation12], %s1793_s20, %s1793_s20, %s1794_s21  }
  0x36   :  { %s1671_s26 = scalar_lea.hbm %s2075_s0, 256 }
  0x37   :  { %p1672_p10 = scmp.ne.s32.totalorder %s2075_s0, %s1671_s26  ;;  %p1675_p11 = scmp.lt.u32.totalorder %s1671_s26, %s2075_s0 }
  0x39   :  { %p1677_p12 = pnand %p1675_p11, %p1672_p10 }
  0x3b   :  { %1680 = shalt.err (!%p1677_p12)
}
  0x3c   :  { %s1681_s25 = scalar_lea.vmem %s1910_s22, 256  ;;  %p1686_p0 = scmp.lt.s32.totalorder %s1910_s22, %s1910_s22 }
  0x3d   :  { %p1682_p13 = scmp.ne.s32.totalorder %s1910_s22, %s1681_s25  ;;  %p1687_p1 = scmp.lt.s32.totalorder %s1681_s25, %s1681_s25 }
  0x3f   :  { %p1688_p2 = por %p1687_p1, %p1686_p0 }
  0x41   :  { %p1689_p3 = pnand %p1688_p2, %p1682_p13 }
  0x43   :  { %1692 = shalt.err (!%p1689_p3)
}
  0x44   :  { %34 = dma.hbm_to_vmem [thread:$0]  %s2075_s0, 256, %s1910_s22, [#allocation3], %s1793_s20, %s1793_s20, %s1794_s21  }
  0x45   :  { %s1797_s27 = smov [#allocation7]   ;;  %s1798_s30 = smov [#allocation10]  }
  0x46   :  { %s54_s29 = sshll.u32 %s1797_s27, 4  ;;  %s82_s14 = sshll.u32 %s1798_s30, 4  ;;  %s55_s29 = int_to_ptr.vmem [resolvable:$true] %s54_s29  ;;  %s1947_s14 = int_to_ptr.vmem [resolvable:$true] %s82_s14 }
  0x47   :  { %s1693_s15 = scalar_lea.hbm %s2078_s3, 1024 }
  0x48   :  { %p1694_p4 = scmp.ne.s32.totalorder %s2078_s3, %s1693_s15  ;;  %p1697_p5 = scmp.lt.u32.totalorder %s1693_s15, %s2078_s3 }
  0x4a   :  { %p1699_p6 = pnand %p1697_p5, %p1694_p4 }
  0x4c   :  { %1702 = shalt.err (!%p1699_p6)
}
  0x4d   :  { %s1703_s0 = scalar_lea.vmem %s55_s29, 1024  ;;  %p1708_p8 = scmp.lt.s32.totalorder %s55_s29, %s55_s29 }
  0x4e   :  { %p1704_p7 = scmp.ne.s32.totalorder %s55_s29, %s1703_s0  ;;  %p1709_p9 = scmp.lt.s32.totalorder %s1703_s0, %s1703_s0 }
  0x50   :  { %p1710_p10 = por %p1709_p9, %p1708_p8 }
  0x52   :  { %p1711_p11 = pnand %p1710_p10, %p1704_p7 }
  0x54   :  { %1714 = shalt.err (!%p1711_p11)
}
  0x55   :  { %60 = dma.hbm_to_vmem [thread:$0]  %s2078_s3, 1024, %s55_s29, [#allocation6], %s1793_s20, %s1793_s20, %s1794_s21  }
  0x56   :  { %s1715_s25 = scalar_lea.hbm %s2082_s7, 2048 }
  0x57   :  { %p1716_p12 = scmp.ne.s32.totalorder %s2082_s7, %s1715_s25  ;;  %p1719_p13 = scmp.lt.u32.totalorder %s1715_s25, %s2082_s7 }
  0x59   :  { %p1721_p0 = pnand %p1719_p13, %p1716_p12 }
  0x5b   :  { %1724 = shalt.err (!%p1721_p0)
}
  0x5c   :  { %s1725_s5 = scalar_lea.vmem %s1947_s14, 2048  ;;  %p1730_p2 = scmp.lt.s32.totalorder %s1947_s14, %s1947_s14 }
  0x5d   :  { %p1726_p1 = scmp.ne.s32.totalorder %s1947_s14, %s1725_s5  ;;  %p1731_p3 = scmp.lt.s32.totalorder %s1725_s5, %s1725_s5 }
  0x5f   :  { %p1732_p4 = por %p1731_p3, %p1730_p2 }
  0x61   :  { %p1733_p5 = pnand %p1732_p4, %p1726_p1 }
  0x63   :  { %1736 = shalt.err (!%p1733_p5)
}
  0x64   :  { %88 = dma.hbm_to_vmem [thread:$0]  %s2082_s7, 2048, %s1947_s14, [#allocation9], %s1793_s20, %s1793_s20, %s1794_s21  }
  0x65   :  { %s1799_s28 = smov [#allocation13]   ;;  %s1737_s26 = scalar_lea.hbm %s2086_s11, 1024 }
  0x66   :  { %s110_s15 = sshll.u32 %s1799_s28, 4  ;;  %p1738_p6 = scmp.ne.s32.totalorder %s2086_s11, %s1737_s26  ;;  %s111_s15 = int_to_ptr.vmem [resolvable:$true] %s110_s15 }
  0x67   :  { %p1741_p7 = scmp.lt.u32.totalorder %s1737_s26, %s2086_s11 }
  0x69   :  { %p1743_p8 = pnand %p1741_p7, %p1738_p6 }
  0x6b   :  { %1746 = shalt.err (!%p1743_p8)
}
  0x6c   :  { %s1747_s23 = scalar_lea.vmem %s111_s15, 1024  ;;  %p1752_p10 = scmp.lt.s32.totalorder %s111_s15, %s111_s15 }
  0x6d   :  { %p1748_p9 = scmp.ne.s32.totalorder %s111_s15, %s1747_s23  ;;  %p1753_p11 = scmp.lt.s32.totalorder %s1747_s23, %s1747_s23 }
  0x6f   :  { %p1754_p12 = por %p1753_p11, %p1752_p10 }
  0x71   :  { %p1755_p13 = pnand %p1754_p12, %p1748_p9 }
  0x73   :  { %1758 = shalt.err (!%p1755_p13)
}
  0x74   :  { %116 = dma.hbm_to_vmem [thread:$0]  %s2086_s11, 1024, %s111_s15, [#allocation12], %s1793_s20, %s1793_s20, %s1794_s21  }
  0x75   :  { %1781 = dma.done.wait [#allocation3], 256  }
  0x76   :  { %1782 = vsyncadd [#allocation3], 4294967040 }
  0x77   :  { %1783 = dma.done.wait [#allocation6], 1280  }
  0x78   :  { %1784 = vsyncadd [#allocation6], 4294966016 }
  0x79   :  { %1785 = dma.done.wait [#allocation9], 4096  }
  0x7a   :  { %1786 = vsyncadd [#allocation9], 4294963200 }
  0x7b   :  { %1787 = dma.done.wait [#allocation12], 2048  }
  0x7c   :  { %1788 = vsyncadd [#allocation12], 4294965248  ;;  %v1541_v0 = vld [vmem:[#allocation7] sm:$0xff]   ;;  %v1542_v1 = vld [vmem:[#allocation7 + $0x8] sm:$0xff]   ;;  %vm293_vm0 = vcmask 261120   ;;  %vm1801_vm1 = vmmov 0  }
  0x7d   :  { %1365 = vmatprep.subr.bf16.mxu0 %v1541_v0  ;;  %v1543_v2 = vld [vmem:[#allocation7 + $0x10] sm:$0xff]   ;;  %v1544_v3 = vld [vmem:[#allocation7 + $0x18] sm:$0xff]   ;;  %v1545_v5 = vld [vmem:[#allocation7 + $0x20] sm:$0xff]  }
  0x7e   :  { %1366 = vmatpush3.bf16.msra.mxu0 %v1541_v0  ;;  %v1549_v4 = vld [vmem:[#allocation5] sm:$0xff]   ;;  %v1546_v6 = vld [vmem:[#allocation7 + $0x28] sm:$0xff]   ;;  %v1548_v8 = vld [vmem:[#allocation7 + $0x38] sm:$0xff]  }
  0x7f   :  { %1367 = vmatprep.subr.bf16.mxu0 %v1542_v1  ;;  %1381 = vmatprep.mubr.bf16.mxu0 %v1549_v4  ;;  %v1547_v7 = vld [vmem:[#allocation7 + $0x30] sm:$0xff]   ;;  %v1550_v9 = vld [vmem:[#allocation5 + $0x8] sm:$0xff]   ;;  %v1999_v10 = vld [vmem:[#allocation2] sm:$0xff]  }
  0x80   :  { %1389 = vmatprep.mubr.msk.bf16.mxu1 %vm293_vm0, %v1999_v10  ;;  %v1212_v12 = vld [vmem:[%s2079_s4] ss:$0 sm:$0xff]  ;;  %v2006_v23 = vld [vmem:[#allocation2 + $0x8] sm:$0xff]   ;;  %v1555_v25 = vld [vmem:[#allocation8 + $0x10] sm:$0xff]  }
  0x81   :  { %v1553_v22 = vld [vmem:[#allocation8] sm:$0xff]   ;;  %v1554_v24 = vld [vmem:[#allocation8 + $0x8] sm:$0xff]   ;;  %v1556_v26 = vld [vmem:[#allocation8 + $0x18] sm:$0xff]  }
  0x82   :  { %1368 = vmatpush3.bf16.msra.mxu0 %v1542_v1  ;;  %v1557_v27 = vld [vmem:[#allocation8 + $0x20] sm:$0xff]   ;;  %v1558_v28 = vld [vmem:[#allocation8 + $0x28] sm:$0xff]   ;;  %v1559_v29 = vld [vmem:[#allocation8 + $0x30] sm:$0xff]  }
  0x83   :  { %1369 = vmatprep.subr.bf16.mxu0 %v1543_v2  ;;  %v1560_v30 = vld [vmem:[#allocation8 + $0x38] sm:$0xff]   ;;  %v1561_v31 = vld [vmem:[#allocation10] sm:$0xff]   ;;  %v1562_v32 = vld [vmem:[#allocation10 + $0x8] sm:$0xff]  }
  0x84   :  { %v1563_v33 = vld [vmem:[#allocation10 + $0x10] sm:$0xff]   ;;  %v1564_v34 = vld [vmem:[#allocation10 + $0x18] sm:$0xff]   ;;  %v1565_v35 = vld [vmem:[#allocation10 + $0x20] sm:$0xff]  }
  0x85   :  { %v1566_v36 = vld [vmem:[#allocation10 + $0x28] sm:$0xff]   ;;  %v1567_v47 = vld [vmem:[#allocation10 + $0x30] sm:$0xff]   ;;  %v1568_v48 = vld [vmem:[#allocation10 + $0x38] sm:$0xff]  }
  0x86   :  { %1370 = vmatpush3.bf16.msra.mxu0 %v1543_v2  ;;  %v1227_v49 = vld [vmem:[%s2081_s6] ss:$0 sm:$0xff] }
  0x87   :  { %1371 = vmatprep.subr.bf16.mxu0 %v1544_v3  ;;  %v1236_v0 = vld [vmem:[%s2083_s8] ss:$0 sm:$0xff] }
  0x8a   :  { %1372 = vmatpush3.bf16.msra.mxu0 %v1544_v3 }
  0x8b   :  { %1373 = vmatprep.subr.bf16.mxu0 %v1545_v5 }
  0x8e   :  { %1374 = vmatpush3.bf16.msra.mxu0 %v1545_v5 }
  0x8f   :  { %1375 = vmatprep.subr.bf16.mxu0 %v1546_v6 }
  0x92   :  { %1376 = vmatpush3.bf16.msra.mxu0 %v1546_v6 }
  0x93   :  { %1377 = vmatprep.subr.bf16.mxu0 %v1547_v7 }
  0x96   :  { %1378 = vmatpush3.bf16.msra.mxu0 %v1547_v7 }
  0x97   :  { %1379 = vmatprep.subr.bf16.mxu0 %v1548_v8 }
  0x9a   :  { %1380 = vmatpush3.bf16.msra.mxu0 %v1548_v8 }
  0x9b   :  { %1413 = vmatprep.subr.bf16.mxu0 %v1561_v31 }
  0x9d   :  { %1382 = vmatmul.mubr.bf16.vlgmr.msra.gmra.mrb[0].mxu0 %v1550_v9 }
  0x9e   :  { %1414 = vmatpush3.bf16.msra.mxu0 %v1561_v31 }
  0x9f   :  { %1415 = vmatprep.subr.bf16.mxu0 %v1562_v32 }
  0xa2   :  { %1416 = vmatpush3.bf16.msra.mxu0 %v1562_v32 }
  0xa3   :  { %1417 = vmatprep.subr.bf16.mxu0 %v1563_v33 }
  0xa6   :  { %1418 = vmatpush3.bf16.msra.mxu0 %v1563_v33 }
  0xa7   :  { %1419 = vmatprep.subr.bf16.mxu0 %v1564_v34 }
  0xaa   :  { %1420 = vmatpush3.bf16.msra.mxu0 %v1564_v34 }
  0xab   :  { %1421 = vmatprep.subr.bf16.mxu0 %v1565_v35 }
  0xae   :  { %1422 = vmatpush3.bf16.msra.mxu0 %v1565_v35 }
  0xaf   :  { %1423 = vmatprep.subr.bf16.mxu0 %v1566_v36 }
  0xb2   :  { %1424 = vmatpush3.bf16.msra.mxu0 %v1566_v36 }
  0xb3   :  { %1425 = vmatprep.subr.bf16.mxu0 %v1567_v47 }
  0xb6   :  { %1426 = vmatpush3.bf16.msra.mxu0 %v1567_v47 }
  0xb7   :  { %1427 = vmatprep.subr.bf16.mxu0 %v1568_v48 }
  0xba   :  { %1428 = vmatpush3.bf16.msra.mxu0 %v1568_v48 }
 0x170   :  { %v1383_v11 = vpop.f32.mrb[0].mxu0 }
 0x171   :  { %v262_v13 = vpop.f32.mrb[1].mxu0  ;;  %v271_v19 = vadd.f32 %v1383_v11, %v1212_v12 }
 0x172   :  { %v1384_v14 = vpop.f32.mrb[2].mxu0  ;;  %v263_v16 = vadd.f32 %v1212_v12, %v262_v13 }
 0x173   :  { %v265_v15 = vpop.f32.mrb[3].mxu0  ;;  %v274_v17 = vadd.f32 %v1384_v14, %v1212_v12 }
 0x174   :  { %v266_v18 = vadd.f32 %v1212_v12, %v265_v15  ;;  %v1569_v15 = vld [vmem:[#allocation8 + $0x40] sm:$0xff]  }
 0x175   :  { %v282_v21 = vpack.c.bf16 %v274_v17, %v271_v19 }
 0x176   :  { %v281_v20 = vpack.c.bf16 %v266_v18, %v263_v16 }
 0x178   :  { %1385 = vmatprep.subr.bf16.mxu1 %v281_v20 }
 0x179   :  { %1386 = vmatpush3.bf16.msra.mxu1 %v281_v20  ;;  %v1574_v20 = vld [vmem:[#allocation8 + $0x68] sm:$0xff]  }
 0x17a   :  { %1387 = vmatprep.subr.bf16.mxu1 %v282_v21 }
 0x17d   :  { %1388 = vmatpush3.bf16.msra.mxu1 %v282_v21  ;;  %v1575_v21 = vld [vmem:[#allocation8 + $0x70] sm:$0xff]  }
 0x17e   :  { %1393 = vmatprep.subr.bf16.mxu1 %v1553_v22 }
 0x180   :  { %1390 = vmatmul.mubr.msk.bf16.vlgmr.msra.gmra.mrb[0].mxu1 %vm293_vm0, %v2006_v23 }
 0x181   :  { %1394 = vmatpush3.bf16.msra.mxu1 %v1553_v22  ;;  %v1576_v22 = vld [vmem:[#allocation8 + $0x78] sm:$0xff]  }
 0x182   :  { %1395 = vmatprep.subr.bf16.mxu1 %v1554_v24 }
 0x185   :  { %1396 = vmatpush3.bf16.msra.mxu1 %v1554_v24  ;;  %v1578_v24 = vld [vmem:[#allocation10 + $0x48] sm:$0xff]  }
 0x186   :  { %1397 = vmatprep.subr.bf16.mxu1 %v1555_v25 }
 0x189   :  { %1398 = vmatpush3.bf16.msra.mxu1 %v1555_v25  ;;  %v1579_v25 = vld [vmem:[#allocation10 + $0x50] sm:$0xff]  }
 0x18a   :  { %1399 = vmatprep.subr.bf16.mxu1 %v1556_v26 }
 0x18d   :  { %1400 = vmatpush3.bf16.msra.mxu1 %v1556_v26  ;;  %v1580_v26 = vld [vmem:[#allocation10 + $0x58] sm:$0xff]  }
 0x18e   :  { %1401 = vmatprep.subr.bf16.mxu1 %v1557_v27 }
 0x191   :  { %1402 = vmatpush3.bf16.msra.mxu1 %v1557_v27  ;;  %v1581_v27 = vld [vmem:[#allocation10 + $0x60] sm:$0xff]  }
 0x192   :  { %1403 = vmatprep.subr.bf16.mxu1 %v1558_v28 }
 0x195   :  { %1404 = vmatpush3.bf16.msra.mxu1 %v1558_v28  ;;  %v1582_v28 = vld [vmem:[#allocation10 + $0x68] sm:$0xff]  }
 0x196   :  { %1405 = vmatprep.subr.bf16.mxu1 %v1559_v29 }
 0x199   :  { %1406 = vmatpush3.bf16.msra.mxu1 %v1559_v29 }
 0x19a   :  { %1407 = vmatprep.subr.bf16.mxu1 %v1560_v30 }
 0x19d   :  { %1408 = vmatpush3.bf16.msra.mxu1 %v1560_v30 }
 0x253   :  { %v1391_v37 = vpop.f32.mrb[0].mxu1 }
 0x254   :  { %v334_v38 = vpop.f32.mrb[1].mxu1  ;;  %v343_v40 = vadd.f32 %v1391_v37, %v271_v19  ;;  %v1573_v19 = vld [vmem:[#allocation8 + $0x60] sm:$0xff]  }
 0x255   :  { %v1392_v39 = vpop.f32.mrb[2].mxu1  ;;  %v335_v43 = vadd.f32 %v334_v38, %v263_v16  ;;  %v1570_v16 = vld [vmem:[#allocation8 + $0x48] sm:$0xff]  }
 0x256   :  { %v346_v41 = vadd.f32 %v1392_v39, %v274_v17  ;;  %v337_v42 = vpop.f32.mrb[3].mxu1  ;;  %v1571_v17 = vld [vmem:[#allocation8 + $0x50] sm:$0xff]  }
 0x257   :  { %v338_v44 = vadd.f32 %v337_v42, %v266_v18  ;;  %v1572_v18 = vld [vmem:[#allocation8 + $0x58] sm:$0xff]   ;;  %v1583_v39 = vld [vmem:[#allocation10 + $0x70] sm:$0xff]  }
 0x258   :  { %v350_v45 = vpack.c.bf16 %v346_v41, %v343_v40  ;;  %v1584_v40 = vld [vmem:[#allocation10 + $0x78] sm:$0xff]   ;;  %v1248_v41 = vld [vmem:[%s2081_s6 + $0x1] ss:$0 sm:$0xff] }
 0x259   :  { %v349_v46 = vpack.c.bf16 %v338_v44, %v335_v43 }
 0x25b   :  { %1409 = vmatprep.mubr.bf16.mxu1 %v349_v46 }
 0x25c   :  { %1410 = vmatmul.mubr.bf16.vlgmr.msra.gmra.mrb[4].mxu1 %v350_v45 }
 0x25d   :  { %1437 = vmatprep.mubr.msk.bf16.mxu1 %vm293_vm0, %v1999_v10 }
 0x32f   :  { %v1411_v50 = vpop.f32.mrb[4].mxu1 }
 0x330   :  { %v465_v51 = vadd.f32 %v1411_v50, %v1227_v49  ;;  %v456_v52 = vpop.f32.mrb[5].mxu1 }
 0x331   :  { %v457_v53 = vadd.f32 %v1227_v49, %v456_v52  ;;  %v1412_v54 = vpop.f32.mrb[6].mxu1 }
 0x332   :  { %v468_v55 = vadd.f32 %v1412_v54, %v1227_v49  ;;  %v459_v56 = vpop.f32.mrb[7].mxu1  ;;  %v473_v58 = vmax.f32 %v465_v51, 0.0 }
 0x333   :  { %v460_v57 = vadd.f32 %v1227_v49, %v459_v56  ;;  %v471_v60 = vmax.f32 %v457_v53, 0.0  ;;  %v1800_v56 = vmov 0.0  }
 0x334   :  { %v474_v59 = vmax.f32 %v468_v55, 0.0 }
 0x335   :  { %v472_v61 = vmax.f32 %v460_v57, 0.0  ;;  %v1258_v57 = vld [vmem:[%s2083_s8 + $0x1] ss:$0 sm:$0xff] }
 0x336   :  { %v476_v62 = vpack.c.bf16 %v474_v59, %v473_v58 }
 0x337   :  { %v475_v63 = vpack.c.bf16 %v472_v61, %v471_v60 }
 0x339   :  { %1429 = vmatprep.mubr.bf16.mxu0 %v475_v63 }
 0x33a   :  { %1430 = vmatmul.mubr.bf16.vlgmr.msra.gmra.mrb[4].mxu0 %v476_v62 }
 0x40d   :  { %v1431_v1 = vpop.f32.mrb[4].mxu0 }
 0x40e   :  { %v582_v2 = vpop.f32.mrb[5].mxu0  ;;  %v591_v7 = vadd.f32 %v1431_v1, %v1236_v0 }
 0x40f   :  { %v2018_v3 = vadd.f32 %v1236_v0, %v582_v2  ;;  %v1432_v4 = vpop.f32.mrb[6].mxu0 }
 0x410   :  { %v594_v5 = vadd.f32 %v1432_v4, %v1236_v0  ;;  %v585_v6 = vpop.f32.mrb[7].mxu0  ;;  %v599_v12 = vmax.f32 %v591_v7, 0.0 }
 0x411   :  { %v586_v8 = vadd.f32 %v1236_v0, %v585_v6  ;;  %v597_v9 = vmax.f32 %v2018_v3, 0.0 }
 0x412   :  { %v600_v10 = vmax.f32 %v594_v5, 0.0 }
 0x413   :  { %v598_v11 = vmax.f32 %v586_v8, 0.0  ;;  %v908_v8 = vld [vmem:[%s2077_s2] sm:$0xf] }
 0x414   :  { %v602_v14 = vpack.c.bf16 %v600_v10, %v599_v12 }
 0x415   :  { %v601_v13 = vpack.c.bf16 %v598_v11, %v597_v9 }
 0x417   :  { %1433 = vmatprep.subr.bf16.mxu1 %v601_v13 }
 0x418   :  { %1434 = vmatpush3.bf16.msra.mxu1 %v601_v13  ;;  %v1589_v13 = vld [vmem:[#allocation11 + $0x20] sm:$0xff]  }
 0x419   :  { %1435 = vmatprep.subr.bf16.mxu1 %v602_v14 }
 0x41c   :  { %1436 = vmatpush3.bf16.msra.mxu1 %v602_v14  ;;  %v1590_v14 = vld [vmem:[#allocation11 + $0x28] sm:$0xff]  }
 0x41d   :  { %1441 = vmatprep.subr.bf16.mxu1 %v1569_v15 }
 0x41f   :  { %1438 = vmatmul.mubr.msk.bf16.vlgmr.msra.gmra.mrb[8].mxu1 %vm293_vm0, %v2006_v23  ;;  %v1577_v23 = vld [vmem:[#allocation10 + $0x40] sm:$0xff]  }
 0x420   :  { %1442 = vmatpush3.bf16.msra.mxu1 %v1569_v15  ;;  %1461 = vmatprep.subr.bf16.mxu0 %v1577_v23  ;;  %v1591_v15 = vld [vmem:[#allocation11 + $0x30] sm:$0xff]  }
 0x421   :  { %1443 = vmatprep.subr.bf16.mxu1 %v1570_v16  ;;  %1462 = vmatpush3.bf16.msra.mxu0 %v1577_v23 }
 0x422   :  { %1463 = vmatprep.subr.bf16.mxu0 %v1578_v24 }
 0x424   :  { %1444 = vmatpush3.bf16.msra.mxu1 %v1570_v16  ;;  %v1592_v16 = vld [vmem:[#allocation11 + $0x38] sm:$0xff]  }
 0x425   :  { %1445 = vmatprep.subr.bf16.mxu1 %v1571_v17  ;;  %1464 = vmatpush3.bf16.msra.mxu0 %v1578_v24 }
 0x426   :  { %1465 = vmatprep.subr.bf16.mxu0 %v1579_v25 }
 0x428   :  { %1446 = vmatpush3.bf16.msra.mxu1 %v1571_v17  ;;  %v1593_v17 = vld [vmem:[#allocation13] sm:$0xff]  }
 0x429   :  { %1447 = vmatprep.subr.bf16.mxu1 %v1572_v18  ;;  %1466 = vmatpush3.bf16.msra.mxu0 %v1579_v25 }
 0x42a   :  { %1467 = vmatprep.subr.bf16.mxu0 %v1580_v26 }
 0x42c   :  { %1448 = vmatpush3.bf16.msra.mxu1 %v1572_v18  ;;  %v1594_v18 = vld [vmem:[#allocation13 + $0x8] sm:$0xff]  }
 0x42d   :  { %1449 = vmatprep.subr.bf16.mxu1 %v1573_v19  ;;  %1468 = vmatpush3.bf16.msra.mxu0 %v1580_v26 }
 0x42e   :  { %1469 = vmatprep.subr.bf16.mxu0 %v1581_v27 }
 0x430   :  { %1450 = vmatpush3.bf16.msra.mxu1 %v1573_v19  ;;  %v1595_v19 = vld [vmem:[#allocation13 + $0x10] sm:$0xff]  }
 0x431   :  { %1451 = vmatprep.subr.bf16.mxu1 %v1574_v20  ;;  %1470 = vmatpush3.bf16.msra.mxu0 %v1581_v27 }
 0x432   :  { %1471 = vmatprep.subr.bf16.mxu0 %v1582_v28 }
 0x434   :  { %1452 = vmatpush3.bf16.msra.mxu1 %v1574_v20  ;;  %v1596_v20 = vld [vmem:[#allocation13 + $0x18] sm:$0xff]  }
 0x435   :  { %1453 = vmatprep.subr.bf16.mxu1 %v1575_v21  ;;  %1472 = vmatpush3.bf16.msra.mxu0 %v1582_v28  ;;  %v1599_v28 = vld [vmem:[#allocation13 + $0x30] sm:$0xff]  }
 0x436   :  { %1473 = vmatprep.subr.bf16.mxu0 %v1583_v39 }
 0x438   :  { %1454 = vmatpush3.bf16.msra.mxu1 %v1575_v21  ;;  %v1597_v21 = vld [vmem:[#allocation13 + $0x20] sm:$0xff]  }
 0x439   :  { %1455 = vmatprep.subr.bf16.mxu1 %v1576_v22  ;;  %1474 = vmatpush3.bf16.msra.mxu0 %v1583_v39 }
 0x43a   :  { %1475 = vmatprep.subr.bf16.mxu0 %v1584_v40 }
 0x43c   :  { %1456 = vmatpush3.bf16.msra.mxu1 %v1576_v22  ;;  %v1598_v22 = vld [vmem:[#allocation13 + $0x28] sm:$0xff]  }
 0x43d   :  { %1476 = vmatpush3.bf16.msra.mxu0 %v1584_v40  ;;  %1481 = vmatprep.subr.bf16.mxu1 %v1800_v56  ;;  %v1277_v40 = vld [vmem:[%s2087_s12] ss:$0 sm:$0xff] }
 0x43e   :  { %1509 = vmatprep.subr.bf16.mxu0 %v1800_v56 }
 0x4f2   :  { %v1439_v29 = vpop.f32.mrb[8].mxu1 }
 0x4f3   :  { %v637_v30 = vpop.f32.mrb[9].mxu1  ;;  %v646_v32 = vadd.f32 %v1439_v29, %v599_v12  ;;  %v1588_v12 = vld [vmem:[#allocation11 + $0x18] sm:$0xff]  }
 0x4f4   :  { %v1440_v31 = vpop.f32.mrb[10].mxu1  ;;  %v638_v35 = vadd.f32 %v637_v30, %v597_v9  ;;  %v1585_v9 = vld [vmem:[#allocation11] sm:$0xff]   ;;  %v1600_v29 = vld [vmem:[#allocation13 + $0x38] sm:$0xff]  }
 0x4f5   :  { %v649_v33 = vadd.f32 %v1440_v31, %v600_v10  ;;  %v640_v34 = vpop.f32.mrb[11].mxu1  ;;  %v1586_v10 = vld [vmem:[#allocation11 + $0x8] sm:$0xff]   ;;  %v1268_v30 = vld [vmem:[%s2085_s10] ss:$0 sm:$0xff]  ;;  %s1802_s10 = smov [#allocation14]  }
 0x4f6   :  { %v641_v36 = vadd.f32 %v640_v34, %v598_v11  ;;  %v1587_v11 = vld [vmem:[#allocation11 + $0x10] sm:$0xff]   ;;  %s1200_s28 = sshll.u32 %s1802_s10, 4  ;;  %s1201_s28 = int_to_ptr.vmem [resolvable:$true] %s1200_s28 }
 0x4f7   :  { %v653_v37 = vpack.c.bf16 %v649_v33, %v646_v32  ;;  %s1759_s12 = scalar_lea.vmem %s1201_s28, 128  ;;  %p1764_p1 = scmp.lt.s32.totalorder %s1201_s28, %s1201_s28 }
 0x4f8   :  { %v652_v38 = vpack.c.bf16 %v641_v36, %v638_v35  ;;  %p1760_p0 = scmp.ne.s32.totalorder %s1201_s28, %s1759_s12  ;;  %p1765_p2 = scmp.lt.s32.totalorder %s1759_s12, %s1759_s12 }
 0x4fa   :  { %1457 = vmatprep.mubr.bf16.mxu1 %v652_v38  ;;  %v1179_v38 = vlaneseq  ;;  %p1766_p3 = por %p1765_p2, %p1764_p1 }
 0x4fb   :  { %1458 = vmatmul.mubr.bf16.vlgmr.msra.gmra.mrb[12].mxu1 %v653_v37 }
 0x4fc   :  { %1485 = vmatprep.mubr.msk.bf16.mxu1 %vm1801_vm1, %v1800_v56  ;;  %v1180_v39 = vand.u32 127, %v1179_v38  ;;  %p1767_p4 = pnand %p1766_p3, %p1760_p0 }
 0x4fe   :  { %vm1181_vm2 = vcmp.lt.s32.totalorder %v1180_v39, 8 }
 0x5ce   :  { %v1459_v42 = vpop.f32.mrb[12].mxu1 }
 0x5cf   :  { %v770_v43 = vadd.f32 %v1459_v42, %v1248_v41  ;;  %v761_v44 = vpop.f32.mrb[13].mxu1 }
 0x5d0   :  { %v762_v45 = vadd.f32 %v1248_v41, %v761_v44  ;;  %v1460_v46 = vpop.f32.mrb[14].mxu1 }
 0x5d1   :  { %v773_v47 = vadd.f32 %v1460_v46, %v1248_v41  ;;  %v764_v48 = vpop.f32.mrb[15].mxu1  ;;  %v778_v50 = vmax.f32 %v770_v43, 0.0 }
 0x5d2   :  { %v765_v49 = vadd.f32 %v1248_v41, %v764_v48  ;;  %v776_v52 = vmax.f32 %v762_v45, 0.0 }
 0x5d3   :  { %v779_v51 = vmax.f32 %v773_v47, 0.0 }
 0x5d4   :  { %v777_v53 = vmax.f32 %v765_v49, 0.0 }
 0x5d5   :  { %v781_v54 = vpack.c.bf16 %v779_v51, %v778_v50 }
 0x5d6   :  { %v780_v55 = vpack.c.bf16 %v777_v53, %v776_v52 }
 0x5d8   :  { %1477 = vmatprep.mubr.bf16.mxu0 %v780_v55 }
 0x5d9   :  { %1478 = vmatmul.mubr.bf16.vlgmr.msra.gmra.mrb[8].mxu0 %v781_v54 }
 0x5da   :  { %1525 = vmatprep.mubr.msk.bf16.mxu0 %vm1801_vm1, %v1800_v56  ;;  %1510 = vmatpush3.bf16.msra.mxu0 %v1593_v17 }
 0x5db   :  { %1511 = vmatprep.subr.bf16.mxu0 %v1800_v56 }
 0x5de   :  { %1512 = vmatpush3.bf16.msra.mxu0 %v1594_v18 }
 0x5df   :  { %1513 = vmatprep.subr.bf16.mxu0 %v1800_v56 }
 0x5e2   :  { %1514 = vmatpush3.bf16.msra.mxu0 %v1595_v19 }
 0x5e3   :  { %1515 = vmatprep.subr.bf16.mxu0 %v1800_v56 }
 0x5e6   :  { %1516 = vmatpush3.bf16.msra.mxu0 %v1596_v20 }
 0x5e7   :  { %1517 = vmatprep.subr.bf16.mxu0 %v1800_v56 }
 0x5ea   :  { %1518 = vmatpush3.bf16.msra.mxu0 %v1597_v21 }
 0x5eb   :  { %1519 = vmatprep.subr.bf16.mxu0 %v1800_v56 }
 0x5ee   :  { %1520 = vmatpush3.bf16.msra.mxu0 %v1598_v22 }
 0x5ef   :  { %1521 = vmatprep.subr.bf16.mxu0 %v1800_v56 }
 0x5f2   :  { %1522 = vmatpush3.bf16.msra.mxu0 %v1599_v28 }
 0x5f3   :  { %1523 = vmatprep.subr.bf16.mxu0 %v1800_v56 }
 0x5f6   :  { %1524 = vmatpush3.bf16.msra.mxu0 %v1600_v29 }
 0x6ac   :  { %v1479_v58 = vpop.f32.mrb[8].mxu0 }
 0x6ad   :  { %v898_v59 = vadd.f32 %v1479_v58, %v1258_v57  ;;  %v889_v60 = vpop.f32.mrb[9].mxu0 }
 0x6ae   :  { %v890_v61 = vadd.f32 %v1258_v57, %v889_v60  ;;  %v1480_v62 = vpop.f32.mrb[10].mxu0 }
 0x6af   :  { %v901_v63 = vadd.f32 %v1480_v62, %v1258_v57  ;;  %v892_v0 = vpop.f32.mrb[11].mxu0  ;;  %v906_v2 = vmax.f32 %v898_v59, 0.0 }
 0x6b0   :  { %v893_v1 = vadd.f32 %v1258_v57, %v892_v0  ;;  %v904_v4 = vmax.f32 %v890_v61, 0.0 }
 0x6b1   :  { %v907_v3 = vmax.f32 %v901_v63, 0.0 }
 0x6b2   :  { %v905_v5 = vmax.f32 %v893_v1, 0.0 }
 0x6b3   :  { %v910_v6 = vpack.c.bf16 %v907_v3, %v906_v2 }
 0x6b4   :  { %v909_v7 = vpack.c.bf16 %v905_v5, %v904_v4 }
 0x6b6   :  { %1482 = vmatpush3.bf16.msra.mxu1 %v909_v7 }
 0x6b7   :  { %1483 = vmatprep.subr.bf16.mxu1 %v1800_v56 }
 0x6ba   :  { %1484 = vmatpush3.bf16.msra.mxu1 %v910_v6 }
 0x6bb   :  { %1489 = vmatprep.subr.bf16.mxu1 %v1800_v56 }
 0x6bd   :  { %1486 = vmatmul.mubr.msk.bf16.vlgmr.msra.gmra.mrb[16].mxu1 %vm293_vm0, %v908_v8 }
 0x6be   :  { %1490 = vmatpush3.bf16.msra.mxu1 %v1585_v9  ;;  %1505 = vmatprep.mubr.msk.bf16.mxu1 %vm1801_vm1, %v1800_v56 }
 0x6bf   :  { %1491 = vmatprep.subr.bf16.mxu1 %v1800_v56 }
 0x6c2   :  { %1492 = vmatpush3.bf16.msra.mxu1 %v1586_v10 }
 0x6c3   :  { %1493 = vmatprep.subr.bf16.mxu1 %v1800_v56 }
 0x6c6   :  { %1494 = vmatpush3.bf16.msra.mxu1 %v1587_v11 }
 0x6c7   :  { %1495 = vmatprep.subr.bf16.mxu1 %v1800_v56 }
 0x6ca   :  { %1496 = vmatpush3.bf16.msra.mxu1 %v1588_v12 }
 0x6cb   :  { %1497 = vmatprep.subr.bf16.mxu1 %v1800_v56 }
 0x6ce   :  { %1498 = vmatpush3.bf16.msra.mxu1 %v1589_v13 }
 0x6cf   :  { %1499 = vmatprep.subr.bf16.mxu1 %v1800_v56 }
 0x6d2   :  { %1500 = vmatpush3.bf16.msra.mxu1 %v1590_v14 }
 0x6d3   :  { %1501 = vmatprep.subr.bf16.mxu1 %v1800_v56 }
 0x6d6   :  { %1502 = vmatpush3.bf16.msra.mxu1 %v1591_v15 }
 0x6d7   :  { %1503 = vmatprep.subr.bf16.mxu1 %v1800_v56 }
 0x6da   :  { %1504 = vmatpush3.bf16.msra.mxu1 %v1592_v16 }
 0x790   :  { %v948_v23 = vpop.f32.mrb[16].mxu1 }
 0x791   :  { %v954_v24 = vpack.c.bf16 %v948_v23, %v948_v23  ;;  %v1487_v25 = vpop.f32.mrb[17].mxu1 }
 0x792   :  { %v951_v26 = vpop.f32.mrb[18].mxu1 }
 0x793   :  { %v1488_v27 = vpop.f32.mrb[19].mxu1  ;;  %1506 = vmatmul.mubr.bf16.vlgmr.msra.gmra.mrb[20].mxu1 %v954_v24 }
 0x866   :  { %v1060_v31 = vpop.f32.mrb[20].mxu1 }
 0x867   :  { %v1061_v32 = vadd.f32 %v1268_v30, %v1060_v31  ;;  %v1507_v33 = vpop.f32.mrb[21].mxu1 }
 0x868   :  { %v1063_v34 = vpop.f32.mrb[22].mxu1 }
 0x869   :  { %v1066_v35 = vmax.f32 %v1061_v32, 0.0  ;;  %v1508_v36 = vpop.f32.mrb[23].mxu1 }
 0x86b   :  { %v1067_v37 = vpack.c.bf16 %v1066_v35, %v1066_v35 }
 0x86d   :  { %1526 = vmatmul.mubr.bf16.vlgmr.msra.gmra.mrb[12].mxu0 %v1067_v37 }
 0x940   :  { %v1173_v41 = vpop.f32.mrb[12].mxu0 }
 0x941   :  { %v1174_v42 = vadd.f32 %v1277_v40, %v1173_v41  ;;  %v1527_v43 = vpop.f32.mrb[13].mxu0 }
 0x942   :  { %v1176_v44 = vpop.f32.mrb[14].mxu0 }
 0x943   :  { %v1528_v45 = vpop.f32.mrb[15].mxu0  ;;  %v1182_v46 = vsel %vm1181_vm2, %v1174_v42, -1e+30 }
 0x944   :  { %1183 = vmax.xlane.f32.xlu0 %v1182_v46 }
 0x9d1   :  { %v1184_v47 = vpop.xlane.xlu0 %1183 }
 0x9d2   :  { %v1185_v48 = vsub.f32 %v1182_v46, %v1184_v47 }
 0x9d4   :  { %v1186_v49 = vmul.f32 1.442695, %v1185_v48 }
 0x9d6   :  { %1601 = vpow2.f32 %v1186_v49 }
 0x9e0   :  { %v1602_v50 = vpop.eup %1601 }
 0x9e1   :  { %1188 = vadd.xlane.f32.xlu0 %v1602_v50 }
 0xa6e   :  { %v1189_v51 = vpop.xlane.xlu0 %1188 }
 0xa6f   :  { %1603 = vlog2.f32 %v1189_v51 }
 0xa79   :  { %v1604_v52 = vpop.eup %1603 }
 0xa7a   :  { %v1191_v53 = vmul.f32 0.6931472, %v1604_v52 }
 0xa7c   :  { %v1192_v54 = vsub.f32 %v1185_v48, %v1191_v53 }
 0xa7e   :  { %1193 = vst [vmem:[#allocation14] sm:$0xff] %v1192_v54 }
 0xa7f   :  { %1770 = shalt.err (!%p1767_p4)
}
 0xa80   :  { %s1771_s1 = scalar_lea.hbm %s2088_s13, 128 }
 0xa81   :  { %p1772_p5 = scmp.ne.s32.totalorder %s2088_s13, %s1771_s1  ;;  %p1775_p6 = scmp.lt.u32.totalorder %s1771_s1, %s2088_s13 }
 0xa83   :  { %p1777_p7 = pnand %p1775_p6, %p1772_p5 }
 0xa85   :  { %1780 = shalt.err (!%p1777_p7)
}
 0xa86   :  { %1203 = dma.vmem_to_hbm [thread:$0]  %s1201_s28, 128, %s2088_s13, [#allocation4]  }
 0xa87   :  { %1789 = dma.done.wait [#allocation4], 128  }
 0xa88   :  { %1790 = vsyncadd [#allocation4], 4294967168 }
 0xa89   :  { %1207 = vsyncpa [#allocation3], 1 }
 0xa8a   :  { %1208 = vsyncpa [#allocation6], 1 }
 0xa8b   :  { %1209 = vsyncpa [#allocation9], 1 }
 0xa8c   :  { %1210 = vsyncpa [#allocation12], 1 }
 0xa8d   :  { %1211 = vsyncpa [#allocation4], 1 }

</bundles_post_ra>
